<compile_context>
chip_gen: v7x
topology: tpu7x:2x2x1
jax: 0.10.0
libtpu: 0.0.40
codegen_flags: <defaults>
</compile_context>

<pallas_src>
import math
import functools

import jax
import jax.numpy as jnp
import numpy as np
from jax.experimental import pallas as pl
from jax.experimental.pallas import tpu as pltpu


# ------------------------------ helpers ------------------------------------ #

def _pick_row_tile(M):
    """Largest convenient row tile that divides M (multiple of 8 when possible)."""
    for t in (512, 256, 128, 64, 32, 16, 8):
        if M % t == 0:
            return t
    return M


# ----------------------------- linear kernel -------------------------------- #

def _linear_kernel(x_ref, w_ref, b_ref, o_ref):
    # x_ref: (tm, Din), w_ref: (Din, Dout), b_ref: (1, Dout), o_ref: (tm, Dout)
    x = x_ref[...].astype(jnp.bfloat16)          # bf16 MXU operands,
    w = w_ref[...].astype(jnp.bfloat16)          # f32 accumulation
    y = jnp.dot(x, w, preferred_element_type=jnp.float32)
    o_ref[...] = (y + b_ref[...]).astype(o_ref.dtype)


def linear(x, w, b):
    """y = x @ w + b for x of shape (B, S, Din); M = B*S is tiled on the grid."""
    B, S, Din = x.shape
    Dout = w.shape[1]
    M = B * S
    tm = _pick_row_tile(M)
    x2 = x.reshape(M, Din)                       # free reshape (contiguous)
    b2 = b.reshape(1, Dout)

    out = pl.pallas_call(
        _linear_kernel,
        out_shape=jax.ShapeDtypeStruct((M, Dout), x.dtype),
        grid_spec=pltpu.PrefetchScalarGridSpec(
            num_scalar_prefetch=0,
            grid=(M // tm,),
            in_specs=[
                pl.BlockSpec((tm, Din), lambda i: (i, 0)),
                pl.BlockSpec((Din, Dout), lambda i: (0, 0)),   # resident weight
                pl.BlockSpec((1, Dout), lambda i: (0, 0)),     # resident bias
            ],
            out_specs=pl.BlockSpec((tm, Dout), lambda i: (i, 0)),
        ),
        compiler_params=pltpu.CompilerParams(
            dimension_semantics=("parallel",)),
    )(x2, w, b2)
    return out.reshape(B, S, Dout)


# ---------------------------- attention kernel ------------------------------ #

def _attention_kernel(qkv_ref, o_ref, *, scalar, heads_per_block, d_head):
    # qkv_ref: (S, heads_per_block * 3 * d_head)  -- interleaved [q_h | k_h | v_h] per head
    # o_ref:   (S, heads_per_block * d_head)      -- merged-head layout (lane-dense block)
    qkv = qkv_ref[...]                            # single VMEM load of the whole group
    outs = []
    for h in range(heads_per_block):              # static unroll over heads in the group
        base = h * 3 * d_head
        q = (qkv[:, base:base + d_head] * scalar).astype(jnp.bfloat16)
        k = qkv[:, base + d_head:base + 2 * d_head].astype(jnp.bfloat16)
        v = qkv[:, base + 2 * d_head:base + 3 * d_head].astype(jnp.bfloat16)

        # scores: contract d_head of q and k without materializing a transpose
        s = jax.lax.dot_general(
            q, k, (((1,), (1,)), ((), ())),
            preferred_element_type=jnp.float32)   # (S, S) f32

        # numerically stable softmax, f32 elementwise, deferred normalization
        s = s - jnp.max(s, axis=-1, keepdims=True)
        p = jnp.exp(s)
        denom = jnp.sum(p, axis=-1, keepdims=True)            # (S, 1)

        pv = jnp.dot(p.astype(jnp.bfloat16), v,
                     preferred_element_type=jnp.float32)       # (S, d_head)
        outs.append(pv * pl.reciprocal(denom, approx=True))    # normalize small matrix

    # single lane-dense store of all heads in this group
    o_ref[...] = jnp.concatenate(outs, axis=-1).astype(o_ref.dtype)


def attention(qkv, *, n_heads, d_head, scalar, out_dtype):
    """qkv: (B, S, 3*D) in interleaved per-head layout -> (B, S, D) merged-head output."""
    B, S, threeD = qkv.shape
    D = n_heads * d_head

    # group heads so the output block is >=128 lanes when possible (lane-dense stores)
    hpg = min(n_heads, max(1, -(-128 // d_head)))
    while n_heads % hpg != 0:
        hpg -= 1
    G = n_heads // hpg

    kern = functools.partial(_attention_kernel, scalar=scalar,
                             heads_per_block=hpg, d_head=d_head)

    return pl.pallas_call(
        kern,
        out_shape=jax.ShapeDtypeStruct((B, S, D), out_dtype),
        grid_spec=pltpu.PrefetchScalarGridSpec(
            num_scalar_prefetch=0,
            grid=(B, G),
            in_specs=[
                # heads of one group are contiguous columns of the interleaved qkv tensor
                pl.BlockSpec((None, S, hpg * 3 * d_head), lambda b, g: (b, 0, g)),
            ],
            # write straight into the merged (B, S, D) layout -> no merge transpose
            out_specs=pl.BlockSpec((None, S, hpg * d_head), lambda b, g: (b, 0, g)),
        ),
        compiler_params=pltpu.CompilerParams(
            dimension_semantics=("parallel", "parallel")),
    )(qkv)


# --------------------------- module-level wrapper --------------------------- #

def multi_head_attention(X, params, n_heads):
    """Forward pass equivalent to MultiHeadAttention.forward.

    X: (batch, seq, d_model) float32
    params: dict with w_qkv (D, 3D), b_qkv (3D,), w_fc (D, D), b_fc (D,)
    """
    B, S, D = X.shape
    dh = D // n_heads
    scalar = 1.0 / math.sqrt(D)   # NOTE: module scales by 1/sqrt(d_model) (intentional)

    qkv = linear(X, params["w_qkv"], params["b_qkv"])                  # (B, S, 3D)
    out = attention(qkv, n_heads=n_heads, d_head=dh, scalar=scalar,
                    out_dtype=X.dtype)                                 # (B, S, D)
    return linear(out, params["w_fc"], params["b_fc"])                 # (B, S, D)


# ------------------------------ reference (JAX) ----------------------------- #

def reference_mha(X, params, n_heads):
    B, S, D = X.shape
    dh = D // n_heads
    scalar = 1.0 / math.sqrt(D)
    ctx = X @ params["w_qkv"] + params["b_qkv"]
    ctx = ctx.reshape(B, S, n_heads, 3 * dh).transpose(0, 2, 1, 3)
    q, k, v = ctx[..., :dh], ctx[..., dh:2 * dh], ctx[..., 2 * dh:]
    attn = jnp.einsum("bhqd,bhkd->bhqk", q, k) * scalar
    p = jax.nn.softmax(attn, axis=-1)
    o = jnp.einsum("bhqk,bhkd->bhqd", p, v)
    o = o.transpose(0, 2, 1, 3).reshape(B, S, D)
    return o @ params["w_fc"] + params["b_fc"]


# ----------------------------------- main ----------------------------------- #

if __name__ == "__main__":
    d_model = 32
    n_heads = 4
    batch = 2
    seq = 8

    key = jax.random.PRNGKey(0)
    kx, k1, k2, k3, k4 = jax.random.split(key, 5)

    bound = 1.0 / math.sqrt(d_model)
    params = {
        # PyTorch stores Linear weights as (out, in); we keep (in, out) and
        # compute x @ W, which is mathematically identical.
        "w_qkv": jax.random.uniform(k1, (d_model, 3 * d_model), jnp.float32, -bound, bound),
        "b_qkv": jax.random.uniform(k2, (3 * d_model,), jnp.float32, -bound, bound),
        "w_fc": jax.random.uniform(k3, (d_model, d_model), jnp.float32, -bound, bound),
        "b_fc": jax.random.uniform(k4, (d_model,), jnp.float32, -bound, bound),
    }

    X = jax.random.normal(kx, (batch, seq, d_model), jnp.float32)

    out = jax.block_until_ready(multi_head_attention(X, params, n_heads))
    ref = jax.block_until_ready(reference_mha(X, params, n_heads))

    np.testing.assert_allclose(np.asarray(out), np.asarray(ref),
                               rtol=2e-2, atol=2e-2)

    print("KERNEL_OK")
</pallas_src>

<mosaic_0001>
module attributes {stable_mosaic.version = 11 : i64} {
  func.func @_linear_kernel(%arg0: i32, %arg1: memref<16x32xf32, #tpu.memory_space<vmem>>, %arg2: memref<32x96xf32, #tpu.memory_space<vmem>>, %arg3: memref<1x96xf32, #tpu.memory_space<vmem>>, %arg4: memref<16x96xf32, #tpu.memory_space<vmem>>) attributes {dimension_semantics = [#tpu.dimension_semantics<parallel>], iteration_bounds = array<i64: 1>, scalar_prefetch = 0 : i64, scratch_operands = 0 : i64, tpu.core_type = #tpu.core_type<tc>, window_params = [{transform_indices = @transform_0, window_bounds = array<i64: 16, 32>}, {pipeline_mode = #tpu.pipeline_mode<synchronous>, transform_indices = @transform_1, window_bounds = array<i64: 32, 96>}, {pipeline_mode = #tpu.pipeline_mode<synchronous>, transform_indices = @transform_2, window_bounds = array<i64: 1, 96>}, {transform_indices = @transform_3, window_bounds = array<i64: 16, 96>}]} {
    %c0 = arith.constant 0 : index
    %c0_0 = arith.constant 0 : index
    %0 = vector.load %arg1[%c0, %c0_0] : memref<16x32xf32, #tpu.memory_space<vmem>>, vector<16x32xf32>
    %1 = arith.truncf %0 : vector<16x32xf32> to vector<16x32xbf16>
    %c0_1 = arith.constant 0 : index
    %c0_2 = arith.constant 0 : index
    %2 = vector.load %arg2[%c0_1, %c0_2] : memref<32x96xf32, #tpu.memory_space<vmem>>, vector<32x96xf32>
    %3 = arith.truncf %2 : vector<32x96xf32> to vector<32x96xbf16>
    %cst = arith.constant dense<0.000000e+00> : vector<16x96xf32>
    %4 = tpu.matmul %1, %3, %cst {dimension_numbers = #tpu.dot_dimension_numbers<[1], [0], [0], [1], [0, 0, 1, 1], [], []>} : vector<16x32xbf16>, vector<32x96xbf16>, vector<16x96xf32> -> vector<16x96xf32>
    %c0_3 = arith.constant 0 : index
    %c0_4 = arith.constant 0 : index
    %5 = vector.load %arg3[%c0_3, %c0_4] : memref<1x96xf32, #tpu.memory_space<vmem>>, vector<1x96xf32>
    %6 = vector.broadcast %5 : vector<1x96xf32> to vector<16x96xf32>
    %7 = arith.addf %4, %6 : vector<16x96xf32>
    %c0_5 = arith.constant 0 : index
    %c0_6 = arith.constant 0 : index
    %8 = vector.load %arg4[%c0_5, %c0_6] : memref<16x96xf32, #tpu.memory_space<vmem>>, vector<16x96xf32>
    tpu.vector_store %arg4[%c0_5, %c0_6], %7 {strides = array<i32>} : memref<16x96xf32, #tpu.memory_space<vmem>>, vector<16x96xf32>,
    return
  }
  func.func @transform_0(%arg0: i32) -> (i32, i32) {
    %c0_i32 = arith.constant 0 : i32
    %c0_i32_0 = arith.constant 0 : i32
    return %arg0, %c0_i32 : i32, i32
  }
  func.func @transform_1(%arg0: i32) -> (i32, i32) {
    %c0_i32 = arith.constant 0 : i32
    %c0_i32_0 = arith.constant 0 : i32
    %c0_i32_1 = arith.constant 0 : i32
    return %c0_i32, %c0_i32_0 : i32, i32
  }
  func.func @transform_2(%arg0: i32) -> (i32, i32) {
    %c0_i32 = arith.constant 0 : i32
    %c0_i32_0 = arith.constant 0 : i32
    %c0_i32_1 = arith.constant 0 : i32
    return %c0_i32, %c0_i32_0 : i32, i32
  }
  func.func @transform_3(%arg0: i32) -> (i32, i32) {
    %c0_i32 = arith.constant 0 : i32
    %c0_i32_0 = arith.constant 0 : i32
    return %arg0, %c0_i32 : i32, i32
  }
}

</mosaic_0001>

<bundles_post_ra>
// kernel: tpu_custom_call.1
= control target key start
LH: loop header
LB: loop body
LE: loop exit
PB: predicated region body
PF: predicated region fallthrough
CT: control target
= control target key end

     0   :  { %8 = vsyncpa [#allocation3], 0  ;;  %s293_s0 = inlined_call_operand.hbm [shape: f32[16,32], index: 0, kind: input, shape index: {}]   ;;  %s294_s1 = inlined_call_operand.hbm [shape: f32[32,96], index: 1, kind: input, shape index: {}]   ;;  %s295_s2 = inlined_call_operand.vmem [shape: f32[1,96], index: 2, kind: input, shape index: {}]   ;;  %s296_s3 = inlined_call_operand.hbm [shape: f32[16,96], index: 3, kind: output, shape index: {}]  }
   0x1   :  { %9 = vsyncpa [#allocation6], 0 }
   0x2   :  { %10 = vsyncpa [#allocation4], 0  ;;  %s218_s12 = smov [#allocation2]   ;;  %s146_s16 = scalar_lea.hbm %s293_s0, 256 }
   0x3   :  { %s16_s13 = sshll.u32 %s218_s12, 4  ;;  %p147_p0 = scmp.ne.s32.totalorder %s293_s0, %s146_s16  ;;  %s17_s13 = int_to_ptr.vmem [resolvable:$true] %s16_s13 }
   0x4   :  { %p150_p1 = scmp.lt.u32.totalorder %s146_s16, %s293_s0 }
   0x6   :  { %p152_p2 = pnand %p150_p1, %p147_p0 }
   0x8   :  { %155 = shalt.err (!%p152_p2)
}
   0x9   :  { %s156_s21 = scalar_lea.vmem %s17_s13, 256  ;;  %p161_p4 = scmp.lt.s32.totalorder %s17_s13, %s17_s13 }
   0xa   :  { %p157_p3 = scmp.ne.s32.totalorder %s17_s13, %s156_s21  ;;  %p162_p5 = scmp.lt.s32.totalorder %s156_s21, %s156_s21 }
   0xc   :  { %p163_p6 = por %p162_p5, %p161_p4 }
   0xe   :  { %p164_p7 = pnand %p163_p6, %p157_p3 }
  0x10   :  { %167 = shalt.err (!%p164_p7)
}
  0x11   :  { %s219_s22 = smov 128   ;;  %s220_s23 = smov 8  }
  0x12   :  { %22 = dma.hbm_to_vmem [thread:$0]  %s293_s0, 256, %s17_s13, [#allocation3], %s219_s22, %s219_s22, %s220_s23  }
  0x13   :  { %s221_s26 = smov [#allocation5]   ;;  %s168_s30 = scalar_lea.hbm %s294_s1, 512 }
  0x14   :  { %s28_s27 = sshll.u32 %s221_s26, 4  ;;  %p169_p8 = scmp.ne.s32.totalorder %s294_s1, %s168_s30  ;;  %s29_s27 = int_to_ptr.vmem [resolvable:$true] %s28_s27 }
  0x15   :  { %p172_p9 = scmp.lt.u32.totalorder %s168_s30, %s294_s1 }
  0x17   :  { %p174_p10 = pnand %p172_p9, %p169_p8 }
  0x19   :  { %177 = shalt.err (!%p174_p10)
}
  0x1a   :  { %s178_s8 = scalar_lea.vmem %s29_s27, 512  ;;  %p183_p12 = scmp.lt.s32.totalorder %s29_s27, %s29_s27 }
  0x1b   :  { %p179_p11 = scmp.ne.s32.totalorder %s29_s27, %s178_s8  ;;  %p184_p13 = scmp.lt.s32.totalorder %s178_s8, %s178_s8 }
  0x1d   :  { %p185_p0 = por %p184_p13, %p183_p12 }
  0x1f   :  { %p186_p1 = pnand %p185_p0, %p179_p11 }
  0x21   :  { %189 = shalt.err (!%p186_p1)
}
  0x22   :  { %34 = dma.hbm_to_vmem [thread:$0]  %s294_s1, 512, %s29_s27, [#allocation6], %s219_s22, %s219_s22, %s220_s23  }
  0x23   :  { %212 = dma.done.wait [#allocation3], 256  }
  0x24   :  { %213 = vsyncadd [#allocation3], 4294967040 }
  0x25   :  { %214 = dma.done.wait [#allocation6], 512  }
  0x26   :  { %215 = vsyncadd [#allocation6], 4294966784  ;;  %v222_v0 = vmov 0.0   ;;  %vm223_vm0 = vmmov 0   ;;  %v47_v1 = vld [vmem:[#allocation5] sm:$0xff]  ;;  %v48_v2 = vld [vmem:[#allocation5 + $0x8] sm:$0xff] }
  0x27   :  { %131 = vmatprep.subr.bf16.mxu0 %v222_v0  ;;  %135 = vmatprep.mubr.msk.bf16.mxu0 %vm223_vm0, %v222_v0  ;;  %v49_v3 = vld [vmem:[#allocation5 + $0x10] sm:$0xff]  ;;  %v51_v4 = vpack.c.bf16 %v48_v2, %v47_v1  ;;  %v50_v5 = vld [vmem:[#allocation5 + $0x18] sm:$0xff]  ;;  %vm60_vm1 = vcmask 261120   ;;  %vm105_vm2 = vcmask 785408   ;;  %s224_s11 = smov [#allocation7]  }
  0x28   :  { %v52_v6 = vpack.c.bf16 %v50_v5, %v49_v3  ;;  %v44_v7 = vld [vmem:[#allocation2] sm:$0xff]  ;;  %v45_v8 = vld [vmem:[#allocation2 + $0x8] sm:$0xff]  ;;  %s113_s12 = sshll.u32 %s224_s11, 4  ;;  %s114_s12 = int_to_ptr.vmem [resolvable:$true] %s113_s12 }
  0x29   :  { %132 = vmatpush3.bf16.msra.mxu0 %v51_v4  ;;  %v46_v9 = vpack.c.bf16 %v45_v8, %v44_v7  ;;  %v126_v10 = vld [vmem:[%s295_s2] ss:$0 sm:$0xff]  ;;  %s190_s13 = scalar_lea.vmem %s114_s12, 256  ;;  %p195_p3 = scmp.lt.s32.totalorder %s114_s12, %s114_s12 }
  0x2a   :  { %133 = vmatprep.subr.bf16.mxu0 %v222_v0  ;;  %p191_p2 = scmp.ne.s32.totalorder %s114_s12, %s190_s13  ;;  %p196_p4 = scmp.lt.s32.totalorder %s190_s13, %s190_s13 }
  0x2c   :  { %p197_p5 = por %p196_p4, %p195_p3 }
  0x2d   :  { %134 = vmatpush3.bf16.msra.mxu0 %v52_v6 }
  0x2e   :  { %p198_p6 = pnand %p197_p5, %p191_p2 }
  0x30   :  { %136 = vmatmul.mubr.msk.bf16.vlgmr.msra.gmra.mrb[0].mxu0 %vm60_vm1, %v46_v9 }
 0x103   :  { %v98_v11 = vpop.f32.mrb[0].mxu0 }
 0x104   :  { %v99_v12 = vadd.f32 %v126_v10, %v98_v11  ;;  %v137_v13 = vpop.f32.mrb[1].mxu0 }
 0x105   :  { %v101_v14 = vpop.f32.mrb[2].mxu0 }
 0x106   :  { %v102_v15 = vadd.f32 %v126_v10, %v101_v14  ;;  %v138_v16 = vpop.f32.mrb[3].mxu0  ;;  %106 = vst.msk [vmem:[#allocation7] sm:$0xff] %vm105_vm2, %v99_v12 }
 0x108   :  { %107 = vst.msk [vmem:[#allocation7 + $0x8] sm:$0xff] %vm105_vm2, %v102_v15 }
 0x109   :  { %201 = shalt.err (!%p198_p6)
}
 0x10a   :  { %s202_s15 = scalar_lea.hbm %s296_s3, 256 }
 0x10b   :  { %p203_p7 = scmp.ne.s32.totalorder %s296_s3, %s202_s15  ;;  %p206_p8 = scmp.lt.u32.totalorder %s202_s15, %s296_s3 }
 0x10d   :  { %p208_p9 = pnand %p206_p8, %p203_p7 }
 0x10f   :  { %211 = shalt.err (!%p208_p9)
}
 0x110   :  { %119 = dma.vmem_to_hbm [thread:$0]  %s114_s12, 256, %s296_s3, [#allocation4], %s219_s22, %s219_s22, %s220_s23  }
 0x111   :  { %216 = dma.done.wait [#allocation4], 256  }
 0x112   :  { %217 = vsyncadd [#allocation4], 4294967040 }
 0x113   :  { %123 = vsyncpa [#allocation3], 1 }
 0x114   :  { %124 = vsyncpa [#allocation6], 1 }
 0x115   :  { %125 = vsyncpa [#allocation4], 1 }

</bundles_post_ra>
